<compile_context>
chip_gen: v7x
topology: tpu7x:2x2x1
jax: 0.10.0
libtpu: 0.0.40
codegen_flags: <defaults>
</compile_context>

<pallas_src>
import functools

import jax
import jax.numpy as jnp
from jax.experimental import pallas as pl
from jax.experimental.pallas import tpu as pltpu


def _round_up(x, m):
    return ((x + m - 1) // m) * m


def _patch_embed_kernel(x_ref, w_ref, b_ref, o_ref):
    # x_ref: (tm, K_pad), w_ref: (K_pad, tn), b_ref: (1, tn) -> o_ref: (tm, tn)
    acc = jnp.dot(x_ref[...], w_ref[...], preferred_element_type=jnp.float32)
    o_ref[...] = (acc + b_ref[...]).astype(o_ref.dtype)


@functools.partial(
    jax.jit,
    static_argnames=("patch_size", "scale_flag", "super_embed_dim",
                     "tm", "tn", "compute_dtype", "out_dtype"))
def patch_embed_super(x, weight, bias, *, patch_size, scale_flag=False,
                      super_embed_dim=None, tm=512, tn=512,
                      compute_dtype=jnp.bfloat16, out_dtype=None):
    """x: (B, C, H, W) NCHW.  weight: (E_sample, C, P, P), bias: (E_sample,)
    (already "sampled" as in set_sample_config).  Returns (B, N, E_sample)."""
    B, C, H, W = x.shape
    P = patch_size
    assert H % P == 0 and W % P == 0
    E = weight.shape[0]
    nph, npw = H // P, W // P
    num_patches = nph * npw

    # Patchify: (B,C,H,W) -> (M, K) with inner (c, kh, kw) ordering matching
    # the OIHW weight flattening.  One XLA fusion pass over x (K pad folded in).
    xp = x.reshape(B, C, nph, P, npw, P)
    xp = jnp.transpose(xp, (0, 2, 4, 1, 3, 5)).reshape(B * num_patches, C * P * P)
    M, K = xp.shape
    K_pad = _round_up(K, 128)
    E_pad = _round_up(E, 128)

    # Fold the super-net scale into weight & bias once (O(K*E)); the kernel
    # body stays scale-free, so no recompile per sample_embed_dim.
    scale = (float(super_embed_dim) / float(E)) if scale_flag else 1.0
    w2d = weight.reshape(E, K).T * scale          # (K, E)
    b2d = (bias * scale).reshape(1, E).astype(jnp.float32)

    if K_pad != K:   # zero-pad contraction dim: exact, lane-dense loads
        xp = jnp.pad(xp, ((0, 0), (0, K_pad - K)))
        w2d = jnp.pad(w2d, ((0, K_pad - K), (0, 0)))
    if E_pad != E:   # lane-dense output stores
        w2d = jnp.pad(w2d, ((0, 0), (0, E_pad - E)))
        b2d = jnp.pad(b2d, ((0, 0), (0, E_pad - E)))

    cdt = jnp.dtype(compute_dtype if compute_dtype is not None else x.dtype)
    xp = xp.astype(cdt)
    w2d = w2d.astype(cdt)
    odt = jnp.dtype(out_dtype if out_dtype is not None else x.dtype)
    in_b, out_b = cdt.itemsize, odt.itemsize

    # --- tiling / VMEM budget (double-buffered blocks; conservative for
    # v7x's 64 MiB per-TC VMEM, v5e/v6e have 128 MiB).
    VMEM_BUDGET = 44 * (1 << 20)

    def vmem_est(tm_, tn_):
        return (2 * tm_ * K_pad * in_b        # xp block (2 buffers)
                + 2 * K_pad * tn_ * in_b      # weight block
                + 2 * tn_ * 4                 # bias block (f32)
                + 2 * tm_ * tn_ * out_b)      # output block

    tm_eff = min(tm, _round_up(M, 8))

    single_n = vmem_est(tm_eff, E_pad) <= VMEM_BUDGET
    if single_n:
        tn_eff = E_pad
    else:
        tn_eff = 128
        for cand in sorted({int(tn), 256, 128}, reverse=True):
            if cand <= E_pad and E_pad % cand == 0 and \
                    vmem_est(tm_eff, cand) <= VMEM_BUDGET:
                tn_eff = cand
                break
        while tm_eff > 8 and vmem_est(tm_eff, tn_eff) > VMEM_BUDGET:
            tm_eff = max(8, ((tm_eff // 2) + 7) // 8 * 8)

    vmem_limit = int(min(max(vmem_est(tm_eff, tn_eff) * 2, 32 << 20), 64 << 20))

    cost = pl.CostEstimate(
        flops=2 * M * K_pad * E_pad,
        transcendentals=0,
        bytes_accessed=(M * K_pad * in_b + K_pad * E_pad * in_b
                        + E_pad * 4 + M * E_pad * out_b))

    if single_n:
        # Weight & bias block index is constant -> DMA'd once, stays resident
        # across the whole M sweep.
        grid = (pl.cdiv(M, tm_eff),)
        in_specs = [
            pl.BlockSpec((tm_eff, K_pad), lambda i: (i, 0)),
            pl.BlockSpec((K_pad, E_pad), lambda i: (0, 0)),
            pl.BlockSpec((1, E_pad), lambda i: (0, 0)),
        ]
        out_specs = pl.BlockSpec((tm_eff, E_pad), lambda i: (i, 0))
        dims = ("parallel",)
    else:
        # Huge-weight fallback: N axis outermost so each weight block is
        # loaded once; xp is re-streamed E_pad // tn_eff times.
        grid = (E_pad // tn_eff, pl.cdiv(M, tm_eff))
        in_specs = [
            pl.BlockSpec((tm_eff, K_pad), lambda j, i: (i, 0)),
            pl.BlockSpec((K_pad, tn_eff), lambda j, i: (0, j)),
            pl.BlockSpec((1, tn_eff), lambda j, i: (0, j)),
        ]
        out_specs = pl.BlockSpec((tm_eff, tn_eff), lambda j, i: (i, j))
        dims = ("parallel", "parallel")

    out = pl.pallas_call(
        _patch_embed_kernel,
        out_shape=jax.ShapeDtypeStruct((M, E_pad), odt),
        grid_spec=pltpu.PrefetchScalarGridSpec(
            num_scalar_prefetch=0,
            grid=grid,
            in_specs=in_specs,
            out_specs=out_specs,
        ),
        compiler_params=pltpu.CompilerParams(
            dimension_semantics=dims,
            vmem_limit_bytes=vmem_limit),
        cost_estimate=cost,
    )(xp, w2d, b2d)

    if E_pad != E:
        out = out[:, :E]
    return out.reshape(B, num_patches, E)


def _reference(x, weight, bias, patch_size, scale_flag, super_embed_dim):
    # pure-JAX reference using lax conv (NCHW / OIHW, stride = patch)
    E = weight.shape[0]
    y = jax.lax.conv_general_dilated(
        x, weight, window_strides=(patch_size, patch_size), padding="VALID",
        dimension_numbers=("NCHW", "OIHW", "NCHW"))
    y = y + bias.reshape(1, E, 1, 1)
    B = x.shape[0]
    y = y.reshape(B, E, -1).transpose(0, 2, 1)    # flatten(2).transpose(1,2)
    if scale_flag:
        y = y * (float(super_embed_dim) / float(E))
    return y


if __name__ == "__main__":
    # Small, module-consistent shapes:
    #   img_size=16, patch_size=4, in_chans=4, super_embed_dim=32,
    #   sample_embed_dim=24 (weight/bias sliced as set_sample_config does).
    B, C, H, W = 2, 4, 16, 16
    P = 4
    super_embed_dim = 32
    sample_embed_dim = 24
    scale_flag = True

    key = jax.random.PRNGKey(0)
    kx, kw, kb = jax.random.split(key, 3)
    x = jax.random.normal(kx, (B, C, H, W), dtype=jnp.float32)
    proj_weight = jax.random.normal(kw, (super_embed_dim, C, P, P),
                                    dtype=jnp.float32) * 0.02
    proj_bias = jax.random.normal(kb, (super_embed_dim,), dtype=jnp.float32) * 0.02

    # set_sample_config: slice the first sample_embed_dim output channels
    sampled_weight = proj_weight[:sample_embed_dim]
    sampled_bias = proj_bias[:sample_embed_dim]

    ref = _reference(x, sampled_weight, sampled_bias, P,
                     scale_flag, super_embed_dim)
    n_patches = (H // P) * (W // P)

    # Exact f32 path (tight tolerance).
    out_f32 = patch_embed_super(x, sampled_weight, sampled_bias, patch_size=P,
                                scale_flag=scale_flag,
                                super_embed_dim=super_embed_dim,
                                compute_dtype=jnp.float32)
    out_f32 = jax.block_until_ready(out_f32)
    assert out_f32.shape == (B, n_patches, sample_embed_dim)
    assert jnp.allclose(out_f32, ref, atol=1e-5, rtol=1e-5)

    # Default bf16-input path (f32 accumulation; looser tolerance expected).
    out_bf = patch_embed_super(x, sampled_weight, sampled_bias, patch_size=P,
                               scale_flag=scale_flag,
                               super_embed_dim=super_embed_dim)
    out_bf = jax.block_until_ready(out_bf)
    assert out_bf.shape == (B, n_patches, sample_embed_dim)
    assert jnp.allclose(out_bf, ref, atol=3e-2, rtol=3e-2)

    print("KERNEL_OK")
</pallas_src>

<mosaic_0001>
module attributes {stable_mosaic.version = 11 : i64} {
  func.func @_patch_embed_kernel(%arg0: i32, %arg1: memref<32x128xf32, #tpu.memory_space<vmem>>, %arg2: memref<128x128xf32, #tpu.memory_space<vmem>>, %arg3: memref<1x128xf32, #tpu.memory_space<vmem>>, %arg4: memref<32x128xf32, #tpu.memory_space<vmem>>) attributes {dimension_semantics = [#tpu.dimension_semantics<parallel>], iteration_bounds = array<i64: 1>, scalar_prefetch = 0 : i64, scratch_operands = 0 : i64, tpu.core_type = #tpu.core_type<tc>, window_params = [{transform_indices = @transform_0, window_bounds = array<i64: 32, 128>}, {pipeline_mode = #tpu.pipeline_mode<synchronous>, transform_indices = @transform_1, window_bounds = array<i64: 128, 128>}, {pipeline_mode = #tpu.pipeline_mode<synchronous>, transform_indices = @transform_2, window_bounds = array<i64: 1, 128>}, {transform_indices = @transform_3, window_bounds = array<i64: 32, 128>}]} {
    %c0 = arith.constant 0 : index
    %c0_0 = arith.constant 0 : index
    %0 = vector.load %arg1[%c0, %c0_0] : memref<32x128xf32, #tpu.memory_space<vmem>>, vector<32x128xf32>
    %c0_1 = arith.constant 0 : index
    %c0_2 = arith.constant 0 : index
    %1 = vector.load %arg2[%c0_1, %c0_2] : memref<128x128xf32, #tpu.memory_space<vmem>>, vector<128x128xf32>
    %cst = arith.constant dense<0.000000e+00> : vector<32x128xf32>
    %2 = tpu.matmul %0, %1, %cst {dimension_numbers = #tpu.dot_dimension_numbers<[1], [0], [0], [1], [0, 0, 1, 1], [], []>} : vector<32x128xf32>, vector<128x128xf32>, vector<32x128xf32> -> vector<32x128xf32>
    %c0_3 = arith.constant 0 : index
    %c0_4 = arith.constant 0 : index
    %3 = vector.load %arg3[%c0_3, %c0_4] : memref<1x128xf32, #tpu.memory_space<vmem>>, vector<1x128xf32>
    %4 = vector.broadcast %3 : vector<1x128xf32> to vector<32x128xf32>
    %5 = arith.addf %2, %4 : vector<32x128xf32>
    %c0_5 = arith.constant 0 : index
    %c0_6 = arith.constant 0 : index
    %6 = vector.load %arg4[%c0_5, %c0_6] : memref<32x128xf32, #tpu.memory_space<vmem>>, vector<32x128xf32>
    tpu.vector_store %arg4[%c0_5, %c0_6], %5 {strides = array<i32>} : memref<32x128xf32, #tpu.memory_space<vmem>>, vector<32x128xf32>,
    return
  }
  func.func @transform_0(%arg0: i32) -> (i32, i32) {
    %c0_i32 = arith.constant 0 : i32
    %c0_i32_0 = arith.constant 0 : i32
    return %arg0, %c0_i32 : i32, i32
  }
  func.func @transform_1(%arg0: i32) -> (i32, i32) {
    %c0_i32 = arith.constant 0 : i32
    %c0_i32_0 = arith.constant 0 : i32
    %c0_i32_1 = arith.constant 0 : i32
    return %c0_i32, %c0_i32_0 : i32, i32
  }
  func.func @transform_2(%arg0: i32) -> (i32, i32) {
    %c0_i32 = arith.constant 0 : i32
    %c0_i32_0 = arith.constant 0 : i32
    %c0_i32_1 = arith.constant 0 : i32
    return %c0_i32, %c0_i32_0 : i32, i32
  }
  func.func @transform_3(%arg0: i32) -> (i32, i32) {
    %c0_i32 = arith.constant 0 : i32
    %c0_i32_0 = arith.constant 0 : i32
    return %arg0, %c0_i32 : i32, i32
  }
}

</mosaic_0001>

<bundles_post_ra>
// kernel: patch_embed_super.1
= control target key start
LH: loop header
LB: loop body
LE: loop exit
PB: predicated region body
PF: predicated region fallthrough
CT: control target
= control target key end

     0   :  { %s379_s0 = inlined_call_operand.vmem [shape: f32[32,128], index: 0, kind: input, shape index: {}]   ;;  %s380_s1 = inlined_call_operand.vmem [shape: f32[128,128], index: 1, kind: input, shape index: {}]   ;;  %s381_s2 = inlined_call_operand.vmem [shape: f32[1,128], index: 2, kind: input, shape index: {}]   ;;  %s382_s3 = inlined_call_operand.hbm [shape: f32[32,128], index: 3, kind: output, shape index: {}]  }
   0x1   :  { %v19_v0 = vld [vmem:[%s380_s1] sm:$0xff]  ;;  %v20_v1 = vld [vmem:[%s380_s1 + $0x8] sm:$0xff]  ;;  %v21_v2 = vld [vmem:[%s380_s1 + $0x10] sm:$0xff] }
   0x2   :  { %v206_v3 = vpack.c.bf16 %v20_v1, %v19_v0  ;;  %v22_v4 = vld [vmem:[%s380_s1 + $0x18] sm:$0xff]  ;;  %v23_v6 = vld [vmem:[%s380_s1 + $0x20] sm:$0xff]  ;;  %v24_v7 = vld [vmem:[%s380_s1 + $0x28] sm:$0xff] }
   0x3   :  { %v210_v5 = vpack.c.bf16 %v22_v4, %v21_v2  ;;  %v214_v8 = vpack.c.bf16 %v24_v7, %v23_v6  ;;  %v15_v9 = vld [vmem:[%s379_s0] sm:$0xff]  ;;  %v17_v10 = vld [vmem:[%s379_s0 + $0x10] sm:$0xff]  ;;  %v26_v12 = vld [vmem:[%s380_s1 + $0x38] sm:$0xff] }
   0x4   :  { %207 = vmatprep.subr.bf16.mxu0 %v206_v3  ;;  %238 = vmatprep.subr.bf16.mxu1 %v206_v3  ;;  %v25_v11 = vld [vmem:[%s380_s1 + $0x30] sm:$0xff] }
   0x5   :  { %209 = vmatpush3.bf16.msra.mxu0 %v206_v3  ;;  %246 = vmatpush3.bf16.msra.mxu1 %v206_v3 }
   0x6   :  { %211 = vmatprep.subr.bf16.mxu0 %v210_v5  ;;  %239 = vmatprep.subr.bf16.mxu1 %v210_v5 }
   0x7   :  { %200 = vmatprep.mubr.f32.mxu0 %v15_v9  ;;  %203 = vmatprep.mubr.f32.mxu1 %v17_v10 }
   0x8   :  { %8 = vsyncpa [#allocation3], 0  ;;  %v218_v13 = vpack.c.bf16 %v26_v12, %v25_v11  ;;  %v27_v14 = vld [vmem:[%s380_s1 + $0x40] sm:$0xff]  ;;  %v28_v15 = vld [vmem:[%s380_s1 + $0x48] sm:$0xff]  ;;  %s281_s26 = smov [#allocation2]  }
   0x9   :  { %213 = vmatpush3.bf16.msra.mxu0 %v210_v5  ;;  %247 = vmatpush3.bf16.msra.mxu1 %v210_v5  ;;  %v222_v16 = vpack.c.bf16 %v28_v15, %v27_v14  ;;  %v29_v17 = vld [vmem:[%s380_s1 + $0x50] sm:$0xff]  ;;  %v30_v18 = vld [vmem:[%s380_s1 + $0x58] sm:$0xff]  ;;  %v31_v20 = vld [vmem:[%s380_s1 + $0x60] sm:$0xff]  ;;  %s136_s27 = sshll.u32 %s281_s26, 4  ;;  %s137_s27 = int_to_ptr.vmem [resolvable:$true] %s136_s27 }
   0xa   :  { %215 = vmatprep.subr.bf16.mxu0 %v214_v8  ;;  %240 = vmatprep.subr.bf16.mxu1 %v214_v8  ;;  %v226_v19 = vpack.c.bf16 %v30_v18, %v29_v17  ;;  %v32_v21 = vld [vmem:[%s380_s1 + $0x68] sm:$0xff]  ;;  %v33_v23 = vld [vmem:[%s380_s1 + $0x70] sm:$0xff]  ;;  %v34_v24 = vld [vmem:[%s380_s1 + $0x78] sm:$0xff]  ;;  %p262_p1 = scmp.lt.s32.totalorder %s137_s27, %s137_s27 }
   0xb   :  { %v230_v22 = vpack.c.bf16 %v32_v21, %v31_v20  ;;  %v234_v25 = vpack.c.bf16 %v34_v24, %v33_v23  ;;  %v16_v26 = vld [vmem:[%s379_s0 + $0x8] sm:$0xff]  ;;  %v18_v27 = vld [vmem:[%s379_s0 + $0x18] sm:$0xff]  ;;  %v147_v28 = vld [vmem:[%s381_s2] ss:$0 sm:$0xff]  ;;  %s257_s0 = scalar_lea.vmem %s137_s27, 512 }
   0xc   :  { %p258_p0 = scmp.ne.s32.totalorder %s137_s27, %s257_s0  ;;  %p263_p2 = scmp.lt.s32.totalorder %s257_s0, %s257_s0 }
   0xd   :  { %217 = vmatpush3.bf16.msra.mxu0 %v214_v8  ;;  %248 = vmatpush3.bf16.msra.mxu1 %v214_v8 }
   0xe   :  { %219 = vmatprep.subr.bf16.mxu0 %v218_v13  ;;  %241 = vmatprep.subr.bf16.mxu1 %v218_v13  ;;  %p264_p3 = por %p263_p2, %p262_p1 }
  0x10   :  { %p265_p4 = pnand %p264_p3, %p258_p0 }
  0x11   :  { %221 = vmatpush3.bf16.msra.mxu0 %v218_v13  ;;  %249 = vmatpush3.bf16.msra.mxu1 %v218_v13 }
  0x12   :  { %223 = vmatprep.subr.bf16.mxu0 %v222_v16  ;;  %242 = vmatprep.subr.bf16.mxu1 %v222_v16 }
  0x15   :  { %225 = vmatpush3.bf16.msra.mxu0 %v222_v16  ;;  %250 = vmatpush3.bf16.msra.mxu1 %v222_v16 }
  0x16   :  { %227 = vmatprep.subr.bf16.mxu0 %v226_v19  ;;  %243 = vmatprep.subr.bf16.mxu1 %v226_v19 }
  0x19   :  { %229 = vmatpush3.bf16.msra.mxu0 %v226_v19  ;;  %251 = vmatpush3.bf16.msra.mxu1 %v226_v19 }
  0x1a   :  { %231 = vmatprep.subr.bf16.mxu0 %v230_v22  ;;  %244 = vmatprep.subr.bf16.mxu1 %v230_v22 }
  0x1d   :  { %233 = vmatpush3.bf16.msra.mxu0 %v230_v22  ;;  %252 = vmatpush3.bf16.msra.mxu1 %v230_v22 }
  0x1e   :  { %235 = vmatprep.subr.bf16.mxu0 %v234_v25  ;;  %245 = vmatprep.subr.bf16.mxu1 %v234_v25 }
  0x21   :  { %237 = vmatpush3.bf16.msra.mxu0 %v234_v25  ;;  %253 = vmatpush3.bf16.msra.mxu1 %v234_v25 }
  0x24   :  { %201 = vmatmul.mubr.f32.vlgmr.msra.gmra.mrb[0].mxu0 %v16_v26  ;;  %204 = vmatmul.mubr.f32.vlgmr.msra.gmra.mrb[0].mxu1 %v18_v27 }
  0xf7   :  { %v202_v29 = vpop.f32.mrb[0].mxu0  ;;  %v205_v30 = vpop.f32.mrb[0].mxu1 }
  0xf8   :  { %v114_v31 = vadd.f32 %v202_v29, %v147_v28  ;;  %v124_v32 = vadd.f32 %v205_v30, %v147_v28  ;;  %v108_v33 = vpop.f32.mrb[1].mxu0  ;;  %v118_v34 = vpop.f32.mrb[1].mxu1 }
  0xf9   :  { %v109_v35 = vadd.f32 %v147_v28, %v108_v33  ;;  %v119_v36 = vadd.f32 %v147_v28, %v118_v34 }
  0xfa   :  { %128 = vst [vmem:[#allocation2 + $0x8] sm:$0xff] %v114_v31  ;;  %130 = vst [vmem:[#allocation2 + $0x18] sm:$0xff] %v124_v32 }
  0xfb   :  { %127 = vst [vmem:[#allocation2] sm:$0xff] %v109_v35  ;;  %129 = vst [vmem:[#allocation2 + $0x10] sm:$0xff] %v119_v36 }
  0xfc   :  { %268 = shalt.err (!%p265_p4)
}
  0xfd   :  { %s269_s29 = scalar_lea.hbm %s382_s3, 512 }
  0xfe   :  { %p270_p5 = scmp.ne.s32.totalorder %s382_s3, %s269_s29  ;;  %p273_p6 = scmp.lt.u32.totalorder %s269_s29, %s382_s3 }
 0x100   :  { %p275_p7 = pnand %p273_p6, %p270_p5 }
 0x102   :  { %278 = shalt.err (!%p275_p7)
}
 0x103   :  { %s282_s7 = smov 128   ;;  %s283_s8 = smov 8  }
 0x104   :  { %142 = dma.vmem_to_hbm [thread:$0]  %s137_s27, 512, %s382_s3, [#allocation3], %s282_s7, %s282_s7, %s283_s8  }
 0x105   :  { %279 = dma.done.wait [#allocation3], 512  }
 0x106   :  { %280 = vsyncadd [#allocation3], 4294966784 }
 0x107   :  { %146 = vsyncpa [#allocation3], 1 }

</bundles_post_ra>
